<compile_context>
chip_gen: v7x
topology: tpu7x:2x2x1
jax: 0.10.0
libtpu: 0.0.40
codegen_flags: <defaults>
</compile_context>

<pallas_src>
import math
import functools

import jax
import jax.numpy as jnp
from jax.experimental import pallas as pl
from jax.experimental.pallas import tpu as pltpu

LN_EPS = 1e-5                       # PyTorch nn.LayerNorm default
_INV_SQRT2 = 1.0 / math.sqrt(2.0)


def _round_up(a, b):
    return (a + b - 1) // b * b


def _query_vmem_bytes():
    """Per-core VMEM capacity; conservative 64 MiB fallback (v7x-safe)."""
    try:
        info = pltpu.get_tpu_info()
        for attr in ("vmem_capacity_bytes", "vmem_bytes", "vmem_size_bytes"):
            v = getattr(info, attr, None)
            if v:
                return int(v)
    except Exception:
        pass
    return 64 * 1024 * 1024


def _gelu(h, approximate):
    if approximate:
        # tanh approximation -> EUP slot (cheap on v6e/v7x); ~1e-3 rel diff.
        return jax.nn.gelu(h, approximate=True)
    # Exact erf form — PyTorch nn.GELU() default.
    return 0.5 * h * (1.0 + jax.lax.erf(h * _INV_SQRT2))


def _layer_norm(x_ref, g_ref, beta_ref, *, dim, dim_padded):
    x = x_ref[...].astype(jnp.float32)
    inv_d = 1.0 / dim
    mu = jnp.sum(x, axis=-1, keepdims=True) * inv_d
    xc = x - mu
    if dim_padded != dim:
        # Mask zero-padded feature lanes so the statistics use the true dim.
        lane = jax.lax.broadcasted_iota(jnp.int32, xc.shape, 1)
        xc = jnp.where(lane < dim, xc, 0.0)
    var = jnp.sum(xc * xc, axis=-1, keepdims=True) * inv_d
    xn = xc * jax.lax.rsqrt(var + LN_EPS)
    return xn * g_ref[...].astype(jnp.float32) + beta_ref[...].astype(jnp.float32)


# --------------------------------------------------------------------------
# Path A: weights resident in VMEM (DMA'd once, constant index_map), 1-D grid
# --------------------------------------------------------------------------
def _ffn_resident_kernel(x_ref, g_ref, beta_ref, w1_ref, b1_ref, w2_ref, b2_ref,
                         o_ref, *, dim, dim_padded, gelu_approximate):
    xn = _layer_norm(x_ref, g_ref, beta_ref, dim=dim, dim_padded=dim_padded)
    xn = xn.astype(w1_ref.dtype)                       # bf16 into the MXU if bf16 weights
    h = jnp.dot(xn, w1_ref[...], preferred_element_type=jnp.float32)
    h = h + b1_ref[...].astype(jnp.float32)
    h = _gelu(h, gelu_approximate)                     # Dropout(p=0) is identity
    y = jnp.dot(h.astype(w2_ref.dtype), w2_ref[...],
                preferred_element_type=jnp.float32)
    o_ref[...] = (y + b2_ref[...].astype(jnp.float32)).astype(o_ref.dtype)


# --------------------------------------------------------------------------
# Path B: hidden-chunked (weights too big for VMEM), 2-D grid (rows x hidden)
# --------------------------------------------------------------------------
def _ffn_chunked_kernel(x_ref, g_ref, beta_ref, w1_ref, b1_ref, w2_ref, b2_ref,
                        o_ref, xn_ref, acc_ref, *, dim, dim_padded, gelu_approximate):
    k = pl.program_id(1)
    last_k = pl.num_programs(1) - 1

    # k == 0: LayerNorm once per row tile (stored in compute dtype) + acc init.
    @pl.when(k == 0)
    def _():
        xn = _layer_norm(x_ref, g_ref, beta_ref, dim=dim, dim_padded=dim_padded)
        xn_ref[...] = xn.astype(xn_ref.dtype)
        acc_ref[...] = jnp.zeros_like(acc_ref)

    # Per hidden chunk: Linear1 -> GELU -> partial Linear2 accumulate (f32).
    h = jnp.dot(xn_ref[...], w1_ref[0], preferred_element_type=jnp.float32)
    h = h + b1_ref[...].astype(jnp.float32)
    h = _gelu(h, gelu_approximate)
    acc_ref[...] += jnp.dot(h.astype(w2_ref.dtype), w2_ref[...],
                            preferred_element_type=jnp.float32)

    @pl.when(k == last_k)
    def _():
        o_ref[...] = (acc_ref[...] + b2_ref[...].astype(jnp.float32)).astype(o_ref.dtype)


@functools.partial(jax.jit,
                   static_argnames=("tm", "tk", "resident", "gelu_approximate",
                                    "vmem_limit"))
def _ffn_impl(x, gamma, beta, w1, b1, w2, b2, *,
              tm, tk, resident, gelu_approximate, vmem_limit):
    B, N, dim = x.shape
    hidden = w1.shape[1]
    R = B * N

    Dp = _round_up(dim, 128)
    Hp0 = _round_up(hidden, 128)
    tk = min(tk, Hp0)
    Hp = Hp0 if resident else _round_up(Hp0, tk)
    Rp = _round_up(R, tm)
    n_row = Rp // tm

    w_bytes = jnp.dtype(w1.dtype).itemsize
    x_bytes = jnp.dtype(x.dtype).itemsize

    # Zero-padding is exact: masked LN stats, zero weight rows/cols, zero
    # biases and GELU(0)=0 contribute nothing to the valid output lanes.
    x2d = jnp.pad(x.reshape(R, dim), ((0, Rp - R), (0, Dp - dim)))
    gamma_p = jnp.pad(gamma.astype(jnp.float32), (0, Dp - dim)).reshape(1, Dp)
    beta_p = jnp.pad(beta.astype(jnp.float32), (0, Dp - dim)).reshape(1, Dp)
    w1_p = jnp.pad(w1, ((0, Dp - dim), (0, Hp - hidden)))
    b1_p = jnp.pad(b1.astype(jnp.float32), (0, Hp - hidden)).reshape(1, Hp)
    w2_p = jnp.pad(w2, ((0, Hp - hidden), (0, Dp - dim)))
    b2_p = jnp.pad(b2.astype(jnp.float32), (0, Dp - dim)).reshape(1, Dp)

    weight_bytes = 2 * Dp * Hp * w_bytes
    flops = 4 * Rp * Dp * Hp            # two matmuls, 2*M*K*N each
    transcend = Rp * Hp                 # activation on hidden units

    if resident:
        cost = pl.CostEstimate(
            flops=flops, transcendentals=transcend,
            bytes_accessed=weight_bytes + 2 * Rp * Dp * x_bytes)
        kernel = functools.partial(_ffn_resident_kernel, dim=dim, dim_padded=Dp,
                                   gelu_approximate=gelu_approximate)
        out2d = pl.pallas_call(
            kernel,
            out_shape=jax.ShapeDtypeStruct((Rp, Dp), x.dtype),
            grid_spec=pltpu.PrefetchScalarGridSpec(
                num_scalar_prefetch=0,
                grid=(n_row,),
                in_specs=[
                    pl.BlockSpec((tm, Dp), lambda i: (i, 0)),    # x row tile
                    pl.BlockSpec((1, Dp), lambda i: (0, 0)),     # gamma
                    pl.BlockSpec((1, Dp), lambda i: (0, 0)),     # beta
                    pl.BlockSpec((Dp, Hp), lambda i: (0, 0)),    # W1 (resident)
                    pl.BlockSpec((1, Hp), lambda i: (0, 0)),     # b1
                    pl.BlockSpec((Hp, Dp), lambda i: (0, 0)),    # W2 (resident)
                    pl.BlockSpec((1, Dp), lambda i: (0, 0)),     # b2
                ],
                out_specs=pl.BlockSpec((tm, Dp), lambda i: (i, 0)),
            ),
            compiler_params=pltpu.CompilerParams(
                dimension_semantics=("parallel",),
                vmem_limit_bytes=vmem_limit,
            ),
            cost_estimate=cost,
        )(x2d, gamma_p, beta_p, w1_p, b1_p, w2_p, b2_p)
    else:
        n_hid = Hp // tk
        # Contiguous-in-HBM W1 hidden chunks: (n_hid, Dp, tk) with [k] = W1[:, k*tk:(k+1)*tk].
        w1_chunks = w1_p.reshape(Dp, n_hid, tk).transpose(1, 0, 2)
        # xn scratch in the weight/compute dtype (bf16 when weights are bf16).
        xn_dtype = w1.dtype if jnp.dtype(w1.dtype).itemsize < 4 else jnp.float32

        cost = pl.CostEstimate(
            flops=flops, transcendentals=transcend,
            bytes_accessed=n_row * weight_bytes + 2 * Rp * Dp * x_bytes)
        kernel = functools.partial(_ffn_chunked_kernel, dim=dim, dim_padded=Dp,
                                   gelu_approximate=gelu_approximate)
        out2d = pl.pallas_call(
            kernel,
            out_shape=jax.ShapeDtypeStruct((Rp, Dp), x.dtype),
            grid_spec=pltpu.PrefetchScalarGridSpec(
                num_scalar_prefetch=0,
                grid=(n_row, n_hid),
                in_specs=[
                    pl.BlockSpec((tm, Dp), lambda i, k: (i, 0)),       # x tile (resident over k)
                    pl.BlockSpec((1, Dp), lambda i, k: (0, 0)),        # gamma
                    pl.BlockSpec((1, Dp), lambda i, k: (0, 0)),        # beta
                    pl.BlockSpec((1, Dp, tk), lambda i, k: (k, 0, 0)), # W1 chunk (contiguous)
                    pl.BlockSpec((1, tk), lambda i, k: (0, k)),        # b1 chunk
                    pl.BlockSpec((tk, Dp), lambda i, k: (k, 0)),       # W2 chunk (contiguous)
                    pl.BlockSpec((1, Dp), lambda i, k: (0, 0)),        # b2
                ],
                out_specs=pl.BlockSpec((tm, Dp), lambda i, k: (i, 0)),
                scratch_shapes=[
                    pltpu.VMEM((tm, Dp), xn_dtype),      # LayerNorm output
                    pltpu.VMEM((tm, Dp), jnp.float32),   # output accumulator
                ],
            ),
            compiler_params=pltpu.CompilerParams(
                dimension_semantics=("parallel", "arbitrary"),
                vmem_limit_bytes=vmem_limit,
            ),
            cost_estimate=cost,
        )(x2d, gamma_p, beta_p, w1_chunks, b1_p, w2_p, b2_p)

    return out2d[:R, :dim].reshape(B, N, dim)


def feed_forward(x, params, *, tile_rows=None, tile_hidden=1024,
                 gelu_approximate=False, weight_resident=None):
    """x: (B, N, dim). params: dict of LayerNorm / Linear weights.

    tile_rows       : M tile (tokens per grid step); None = auto from VMEM budget.
    tile_hidden     : hidden-dim chunk (only used on the chunked fallback path).
    gelu_approximate: tanh GELU (EUP) instead of exact erf (default preserves
                      PyTorch nn.GELU() semantics).
    weight_resident : force (True/False) the weight-resident fast path; None = auto.
    """
    B, N, dim = x.shape
    hidden = params["w1"].shape[1]
    R = B * N

    w_bytes = jnp.dtype(params["w1"].dtype).itemsize
    x_bytes = jnp.dtype(x.dtype).itemsize
    Dp = _round_up(dim, 128)
    Hp = _round_up(hidden, 128)

    # Generation-aware VMEM budget (~75% of per-core capacity: ≈96 MiB on
    # v5e/v6e, ≈48 MiB on v7x) — never request the full per-TC VMEM.
    vmem_budget = int(0.75 * _query_vmem_bytes())
    weight_bytes = 2 * Dp * Hp * w_bytes

    def resident_bytes(tm):
        return (weight_bytes
                + 4 * tm * Dp * x_bytes          # x + out, double-buffered
                + 2 * tm * Hp * 4                # hidden activation (f32) + slack
                + 3 * tm * Dp * 4)               # xn / y temporaries

    def chunked_bytes(tm, tk):
        xn_b = w_bytes if w_bytes < 4 else 4
        return (4 * tm * Dp * x_bytes            # x + out, double-buffered
                + 4 * Dp * tk * w_bytes          # W1 + W2 chunks, double-buffered
                + tm * Dp * (xn_b + 4)           # xn + f32 accumulator scratch
                + 2 * tm * tk * 4                # h temporary
                + 8 * (tk + 3 * Dp) * 4)         # biases / gamma / beta

    row_cap = _round_up(R, 8)
    tk = min(_round_up(tile_hidden, 128), _round_up(Hp, 128))

    resident = weight_resident
    if resident is None:
        resident = resident_bytes(min(128, row_cap)) <= vmem_budget

    if tile_rows is not None:
        tm = min(_round_up(tile_rows, 8), row_cap)
    else:
        tm = 8
        for c in (2048, 1536, 1024, 768, 512, 384, 256, 128, 64, 32, 16, 8):
            c = min(c, row_cap)
            fits = (resident_bytes(c) if resident else chunked_bytes(c, tk)) <= vmem_budget
            if fits:
                tm = c
                break

    # Guarantee >= 2 row tiles when possible so the "parallel" grid axis can
    # feed both TensorCores on v7x (free on single-TC v5e/v6e).
    if R > 8:
        tm = min(tm, _round_up((R + 1) // 2, 8))
    tm = max(int(tm), 8)

    vmem_limit = int(min(vmem_budget, 128 * 1024 * 1024))

    return _ffn_impl(x, params["gamma"], params["beta"],
                     params["w1"], params["b1"], params["w2"], params["b2"],
                     tm=tm, tk=int(tk), resident=bool(resident),
                     gelu_approximate=bool(gelu_approximate),
                     vmem_limit=vmem_limit)


def init_params(key, dim, hidden_dim, dtype=jnp.float32):
    """Synthetic init matching nn.LayerNorm / nn.Linear shapes & init ranges."""
    k1, k2, k3, k4 = jax.random.split(key, 4)
    gamma = jnp.ones((dim,), jnp.float32)            # LayerNorm default init
    beta = jnp.zeros((dim,), jnp.float32)
    lim1 = 1.0 / math.sqrt(dim)
    lim2 = 1.0 / math.sqrt(hidden_dim)
    # Stored as (in, out) so the kernel does x @ W (== PyTorch x @ weight.T).
    w1 = jax.random.uniform(k1, (dim, hidden_dim), jnp.float32, -lim1, lim1).astype(dtype)
    b1 = jax.random.uniform(k2, (hidden_dim,), jnp.float32, -lim1, lim1)
    w2 = jax.random.uniform(k3, (hidden_dim, dim), jnp.float32, -lim2, lim2).astype(dtype)
    b2 = jax.random.uniform(k4, (dim,), jnp.float32, -lim2, lim2)
    return dict(gamma=gamma, beta=beta, w1=w1, b1=b1, w2=w2, b2=b2)


def feed_forward_ref(x, params, approximate=False):
    """Pure-JAX f32 reference (weights upcast to f32 if stored in bf16)."""
    w1 = params["w1"].astype(jnp.float32)
    w2 = params["w2"].astype(jnp.float32)
    mu = jnp.mean(x, axis=-1, keepdims=True)
    var = jnp.mean((x - mu) ** 2, axis=-1, keepdims=True)
    xn = (x - mu) * jax.lax.rsqrt(var + LN_EPS)
    xn = xn * params["gamma"] + params["beta"]
    h = xn @ w1 + params["b1"]
    if approximate:
        h = jax.nn.gelu(h, approximate=True)
    else:
        h = 0.5 * h * (1.0 + jax.lax.erf(h * _INV_SQRT2))
    return h @ w2 + params["b2"]


if __name__ == "__main__":
    key = jax.random.PRNGKey(0)
    kx, kp, kx2, kp2 = jax.random.split(key, 4)

    # --- Test 1: lane-aligned shapes, f32 params, weight-resident fast path ---
    B, N, DIM, HIDDEN = 2, 8, 128, 256
    x = jax.random.normal(kx, (B, N, DIM), jnp.float32)
    params = init_params(kp, DIM, HIDDEN, dtype=jnp.float32)
    out = jax.block_until_ready(feed_forward(x, params))
    ref = feed_forward_ref(x, params)
    assert out.shape == (B, N, DIM)
    assert jnp.allclose(out, ref, atol=1e-4, rtol=1e-4), "resident-path mismatch"

    # --- Test 2: unaligned dim/hidden + forced chunked path (padding, masked
    #             LayerNorm, contiguous W1 chunks, accumulator over 2 k-tiles) ---
    B2, N2, DIM2, HIDDEN2 = 2, 8, 96, 160
    x2 = jax.random.normal(kx2, (B2, N2, DIM2), jnp.float32)
    params2 = init_params(kp2, DIM2, HIDDEN2, dtype=jnp.float32)
    out2 = jax.block_until_ready(
        feed_forward(x2, params2, tile_rows=8, tile_hidden=128, weight_resident=False))
    ref2 = feed_forward_ref(x2, params2)
    assert out2.shape == (B2, N2, DIM2)
    assert jnp.allclose(out2, ref2, atol=1e-4, rtol=1e-4), "chunked-path mismatch"

    # --- Test 3: bf16 weights (MXU-native, halved weight DMA), f32 accumulation ---
    params_bf16 = {k: (v.astype(jnp.bfloat16) if k in ("w1", "w2") else v)
                   for k, v in params.items()}
    out3 = jax.block_until_ready(feed_forward(x, params_bf16))
    ref3 = feed_forward_ref(x, params_bf16)
    assert jnp.max(jnp.abs(out3 - ref3)) < 5e-2, "bf16 resident-path mismatch"
    out3c = jax.block_until_ready(
        feed_forward(x, params_bf16, tile_rows=8, tile_hidden=128, weight_resident=False))
    assert jnp.max(jnp.abs(out3c - ref3)) < 5e-2, "bf16 chunked-path mismatch"

    # --- Test 4: tanh-approximate GELU option (EUP path on v6e/v7x) ---
    out4 = jax.block_until_ready(feed_forward(x, params, gelu_approximate=True))
    ref4 = feed_forward_ref(x, params, approximate=True)
    assert jnp.allclose(out4, ref4, atol=1e-4, rtol=1e-4), "approx-GELU mismatch"

    print("KERNEL_OK")
</pallas_src>

<mosaic_0001>
module attributes {stable_mosaic.version = 11 : i64} {
  func.func @_ffn_resident_kernel(%arg0: i32, %arg1: memref<8x128xf32, #tpu.memory_space<vmem>>, %arg2: memref<1x128xf32, #tpu.memory_space<vmem>>, %arg3: memref<1x128xf32, #tpu.memory_space<vmem>>, %arg4: memref<128x256xf32, #tpu.memory_space<vmem>>, %arg5: memref<1x256xf32, #tpu.memory_space<vmem>>, %arg6: memref<256x128xf32, #tpu.memory_space<vmem>>, %arg7: memref<1x128xf32, #tpu.memory_space<vmem>>, %arg8: memref<8x128xf32, #tpu.memory_space<vmem>>) attributes {dimension_semantics = [#tpu.dimension_semantics<parallel>], iteration_bounds = array<i64: 2>, scalar_prefetch = 0 : i64, scratch_operands = 0 : i64, tpu.core_type = #tpu.core_type<tc>, window_params = [{transform_indices = @transform_0, window_bounds = array<i64: 8, 128>}, {pipeline_mode = #tpu.pipeline_mode<synchronous>, transform_indices = @transform_1, window_bounds = array<i64: 1, 128>}, {pipeline_mode = #tpu.pipeline_mode<synchronous>, transform_indices = @transform_2, window_bounds = array<i64: 1, 128>}, {pipeline_mode = #tpu.pipeline_mode<synchronous>, transform_indices = @transform_3, window_bounds = array<i64: 128, 256>}, {pipeline_mode = #tpu.pipeline_mode<synchronous>, transform_indices = @transform_4, window_bounds = array<i64: 1, 256>}, {pipeline_mode = #tpu.pipeline_mode<synchronous>, transform_indices = @transform_5, window_bounds = array<i64: 256, 128>}, {pipeline_mode = #tpu.pipeline_mode<synchronous>, transform_indices = @transform_6, window_bounds = array<i64: 1, 128>}, {transform_indices = @transform_7, window_bounds = array<i64: 8, 128>}]} {
    %c0 = arith.constant 0 : index
    %c0_0 = arith.constant 0 : index
    %0 = vector.load %arg1[%c0, %c0_0] : memref<8x128xf32, #tpu.memory_space<vmem>>, vector<8x128xf32>
    %cst = arith.constant dense<0.000000e+00> : vector<8xf32>
    %1 = vector.multi_reduction <add>, %0, %cst [1] : vector<8x128xf32> to vector<8xf32>
    %2 = vector.shape_cast %1 : vector<8xf32> to vector<8x1xf32>
    %cst_1 = arith.constant 7.812500e-03 : f32
    %3 = vector.broadcast %cst_1 : f32 to vector<8x1xf32>
    %4 = arith.mulf %2, %3 : vector<8x1xf32>
    %5 = vector.broadcast %4 : vector<8x1xf32> to vector<8x128xf32>
    %6 = arith.subf %0, %5 : vector<8x128xf32>
    %7 = arith.mulf %6, %6 : vector<8x128xf32>
    %cst_2 = arith.constant dense<0.000000e+00> : vector<8xf32>
    %8 = vector.multi_reduction <add>, %7, %cst_2 [1] : vector<8x128xf32> to vector<8xf32>
    %9 = vector.shape_cast %8 : vector<8xf32> to vector<8x1xf32>
    %cst_3 = arith.constant 7.812500e-03 : f32
    %10 = vector.broadcast %cst_3 : f32 to vector<8x1xf32>
    %11 = arith.mulf %9, %10 : vector<8x1xf32>
    %cst_4 = arith.constant 9.99999974E-6 : f32
    %12 = vector.broadcast %cst_4 : f32 to vector<8x1xf32>
    %13 = arith.addf %11, %12 : vector<8x1xf32>
    %14 = math.rsqrt %13 : vector<8x1xf32>
    %15 = vector.broadcast %14 : vector<8x1xf32> to vector<8x128xf32>
    %16 = arith.mulf %6, %15 : vector<8x128xf32>
    %c0_5 = arith.constant 0 : index
    %c0_6 = arith.constant 0 : index
    %17 = vector.load %arg2[%c0_5, %c0_6] : memref<1x128xf32, #tpu.memory_space<vmem>>, vector<1x128xf32>
    %18 = vector.broadcast %17 : vector<1x128xf32> to vector<8x128xf32>
    %19 = arith.mulf %16, %18 : vector<8x128xf32>
    %c0_7 = arith.constant 0 : index
    %c0_8 = arith.constant 0 : index
    %20 = vector.load %arg3[%c0_7, %c0_8] : memref<1x128xf32, #tpu.memory_space<vmem>>, vector<1x128xf32>
    %21 = vector.broadcast %20 : vector<1x128xf32> to vector<8x128xf32>
    %22 = arith.addf %19, %21 : vector<8x128xf32>
    %c0_9 = arith.constant 0 : index
    %c0_10 = arith.constant 0 : index
    %23 = vector.load %arg4[%c0_9, %c0_10] : memref<128x256xf32, #tpu.memory_space<vmem>>, vector<128x256xf32>
    %cst_11 = arith.constant dense<0.000000e+00> : vector<8x256xf32>
    %24 = tpu.matmul %22, %23, %cst_11 {dimension_numbers = #tpu.dot_dimension_numbers<[1], [0], [0], [1], [0, 0, 1, 1], [], []>} : vector<8x128xf32>, vector<128x256xf32>, vector<8x256xf32> -> vector<8x256xf32>
    %c0_12 = arith.constant 0 : index
    %c0_13 = arith.constant 0 : index
    %25 = vector.load %arg5[%c0_12, %c0_13] : memref<1x256xf32, #tpu.memory_space<vmem>>, vector<1x256xf32>
    %26 = vector.broadcast %25 : vector<1x256xf32> to vector<8x256xf32>
    %27 = arith.addf %24, %26 : vector<8x256xf32>
    %cst_14 = arith.constant 5.000000e-01 : f32
    %28 = vector.broadcast %cst_14 : f32 to vector<8x256xf32>
    %29 = arith.mulf %28, %27 : vector<8x256xf32>
    %cst_15 = arith.constant 0.707106769 : f32
    %30 = vector.broadcast %cst_15 : f32 to vector<8x256xf32>
    %31 = arith.mulf %27, %30 : vector<8x256xf32>
    %32 = math.erf %31 : vector<8x256xf32>
    %cst_16 = arith.constant 1.000000e+00 : f32
    %33 = vector.broadcast %cst_16 : f32 to vector<8x256xf32>
    %34 = arith.addf %33, %32 : vector<8x256xf32>
    %35 = arith.mulf %29, %34 : vector<8x256xf32>
    %c0_17 = arith.constant 0 : index
    %c0_18 = arith.constant 0 : index
    %36 = vector.load %arg6[%c0_17, %c0_18] : memref<256x128xf32, #tpu.memory_space<vmem>>, vector<256x128xf32>
    %cst_19 = arith.constant dense<0.000000e+00> : vector<8x128xf32>
    %37 = tpu.matmul %35, %36, %cst_19 {dimension_numbers = #tpu.dot_dimension_numbers<[1], [0], [0], [1], [0, 0, 1, 1], [], []>} : vector<8x256xf32>, vector<256x128xf32>, vector<8x128xf32> -> vector<8x128xf32>
    %c0_20 = arith.constant 0 : index
    %c0_21 = arith.constant 0 : index
    %38 = vector.load %arg7[%c0_20, %c0_21] : memref<1x128xf32, #tpu.memory_space<vmem>>, vector<1x128xf32>
    %39 = vector.broadcast %38 : vector<1x128xf32> to vector<8x128xf32>
    %40 = arith.addf %37, %39 : vector<8x128xf32>
    %c0_22 = arith.constant 0 : index
    %c0_23 = arith.constant 0 : index
    %41 = vector.load %arg8[%c0_22, %c0_23] : memref<8x128xf32, #tpu.memory_space<vmem>>, vector<8x128xf32>
    tpu.vector_store %arg8[%c0_22, %c0_23], %40 {strides = array<i32>} : memref<8x128xf32, #tpu.memory_space<vmem>>, vector<8x128xf32>,
    return
  }
  func.func @transform_0(%arg0: i32) -> (i32, i32) {
    %c0_i32 = arith.constant 0 : i32
    %c0_i32_0 = arith.constant 0 : i32
    return %arg0, %c0_i32 : i32, i32
  }
  func.func @transform_1(%arg0: i32) -> (i32, i32) {
    %c0_i32 = arith.constant 0 : i32
    %c0_i32_0 = arith.constant 0 : i32
    %c0_i32_1 = arith.constant 0 : i32
    return %c0_i32, %c0_i32_0 : i32, i32
  }
  func.func @transform_2(%arg0: i32) -> (i32, i32) {
    %c0_i32 = arith.constant 0 : i32
    %c0_i32_0 = arith.constant 0 : i32
    %c0_i32_1 = arith.constant 0 : i32
    return %c0_i32, %c0_i32_0 : i32, i32
  }
  func.func @transform_3(%arg0: i32) -> (i32, i32) {
    %c0_i32 = arith.constant 0 : i32
    %c0_i32_0 = arith.constant 0 : i32
    %c0_i32_1 = arith.constant 0 : i32
    return %c0_i32, %c0_i32_0 : i32, i32
  }
  func.func @transform_4(%arg0: i32) -> (i32, i32) {
    %c0_i32 = arith.constant 0 : i32
    %c0_i32_0 = arith.constant 0 : i32
    %c0_i32_1 = arith.constant 0 : i32
    return %c0_i32, %c0_i32_0 : i32, i32
  }
  func.func @transform_5(%arg0: i32) -> (i32, i32) {
    %c0_i32 = arith.constant 0 : i32
    %c0_i32_0 = arith.constant 0 : i32
    %c0_i32_1 = arith.constant 0 : i32
    return %c0_i32, %c0_i32_0 : i32, i32
  }
  func.func @transform_6(%arg0: i32) -> (i32, i32) {
    %c0_i32 = arith.constant 0 : i32
    %c0_i32_0 = arith.constant 0 : i32
    %c0_i32_1 = arith.constant 0 : i32
    return %c0_i32, %c0_i32_0 : i32, i32
  }
  func.func @transform_7(%arg0: i32) -> (i32, i32) {
    %c0_i32 = arith.constant 0 : i32
    %c0_i32_0 = arith.constant 0 : i32
    return %arg0, %c0_i32 : i32, i32
  }
}

</mosaic_0001>

<bundles_post_ra>
// kernel: _ffn_impl.1
= control target key start
LH: loop header
LB: loop body
LE: loop exit
PB: predicated region body
PF: predicated region fallthrough
CT: control target
= control target key end

     0   :  { %12 = vsyncpa [#allocation3], 0  ;;  %s1214_s0 = inlined_call_operand.vmem [shape: f32[16,128], index: 0, kind: input, shape index: {}]   ;;  %s1215_s1 = inlined_call_operand.vmem [shape: f32[1,128], index: 1, kind: input, shape index: {}]   ;;  %s1216_s2 = inlined_call_operand.vmem [shape: f32[1,128], index: 2, kind: input, shape index: {}]   ;;  %s1217_s3 = inlined_call_operand.hbm [shape: f32[128,256], index: 3, kind: input, shape index: {}]   ;;  %s1218_s4 = inlined_call_operand.vmem [shape: f32[1,256], index: 4, kind: input, shape index: {}]   ;;  %s1219_s5 = inlined_call_operand.hbm [shape: f32[256,128], index: 5, kind: input, shape index: {}]   ;;  %s1220_s6 = inlined_call_operand.vmem [shape: f32[1,128], index: 6, kind: input, shape index: {}]   ;;  %s1221_s7 = inlined_call_operand.hbm [shape: f32[16,128], index: 7, kind: output, shape index: {}]  }
   0x1   :  { %13 = vsyncpa [#allocation6], 0 }
   0x2   :  { %14 = vsyncpa [#allocation4], 0 }
   0x3   :  { %16 = vsyncpa [#allocation4 + $0x1], 0  ;;  %s1025_s24 = smov 0   ;;  %s1027_s25 = smov 0  }
   0x4   :  { %s1029_s26 = smov 0   ;;  %s1031_s27 = smov 0  }
   0x5 LB: > { %s1046_s28 = sadd.s32 4294967295, %s975_s27   ;;  %s662_s29 = sadd.s32 4294967294, %s975_s27   ;;  %s975_s27 = sphi %s1031_s27, %s1241_s27   ;;  %s971_s26 = sphi %s1029_s26, %s1240_s26   ;;  %s967_s25 = sphi %s1027_s25, %s1239_s25   ;;  %s963_s24 = sphi %s1025_s24, %s1238_s24  }
   0x6   : > { %s1050_s30 = sadd.s32 1, %s975_s27   ;;  %s181_s8 = sadd.s32 1, %s971_s26 }
   0x7   : > { %s178_s9 = ssub.s32 %s975_s27, %s1050_s30  ;;  %p191_p0 = scmp.ne.s32.totalorder %s971_s26, %s967_s25 }
   0x8   : > { %p179_p1 = scmp.eq.s32.totalorder %s178_s9, 0  ;;  %p192_p2 = scmp.eq.s32.totalorder %s1046_s28, 1 }
   0x9   : > { %p197_p3 = scmp.ne.s32.totalorder %s967_s25, %s963_s24  ;;  %p198_p4 = scmp.eq.s32.totalorder %s662_s29, 1 }
   0xa   : > { %s1061_s10 = scalar_select %p179_p1, %s971_s26, %s181_s8  }
   0xb   : > { %p1063_p5 = por %p192_p2, %p191_p0  ;;  %p1067_p6 = por %p198_p4, %p197_p3 }
   0xc   : > { %1225 = sst [smem:[#allocation11_spill]] %s1061_s10  ;;  %p663_p7 = scmp.ge.s32.totalorder %s975_s27, 1 }
   0xd   : > { %s1226_s11 = scalar_select %p1063_p5, 1, 0 }
   0xe   : > { %s1227_s12 = scalar_select %p1067_p6, 1, 0 }
   0xf   : > { %p205_p8 = scmp.lt.s32.totalorder %s975_s27, 3  ;;  %p1222_p9 = scmp.eq.s32.totalorder %s1046_s28, 0 }
  0x10   : > { %s977_s14 = smov [#allocation2]   ;;  %s978_s17 = smov [#allocation5]  }
  0x11   : > { %p1074_p10 = pnand %p663_p7, %p205_p8  ;;  %s223_s15 = sshll.u32 %s977_s14, 4  ;;  %s224_s15 = int_to_ptr.vmem [resolvable:$true] %s223_s15 }
  0x12   : > { %s239_s18 = sshll.u32 %s978_s17, 4  ;;  %s849_s21 = scalar_lea.hbm %s1217_s3, 4096  ;;  %s1086_s18 = int_to_ptr.vmem [resolvable:$true] %s239_s18 }
  0x13   : > { %s1228_s13 = scalar_select %p1074_p10, 1, 0 }
  0x14   : > { %p788_p11 = pneg %p1074_p10  ;;  %p850_p13 = scmp.ne.s32.totalorder %s1217_s3, %s849_s21 }
  0x15   : > { %p856_p3 = scmp.lt.u32.totalorder %s849_s21, %s1217_s3 }
  0x16   : > { %p1082_p12 = pnand %p1222_p9, %p788_p11 }
  0x18   : > { %p851_p0 = pneg %p1082_p12 }
  0x1a   : > { %p852_p1 = pnand %p851_p0, %p850_p13 }
  0x1c   : > { %p853_p2 = pneg %p852_p1 }
  0x1e   : > { %p858_p4 = pnand %p856_p3, %p853_p2 }
  0x20   : > { %861 = shalt.err (!%p858_p4)
}
  0x21   : > { %s862_s9 = scalar_lea.vmem %s224_s15, 4096  ;;  %p870_p9 = scmp.lt.s32.totalorder %s224_s15, %s224_s15 }
  0x22   : > { %p863_p7 = scmp.ne.s32.totalorder %s224_s15, %s862_s9  ;;  %p871_p6 = scmp.lt.s32.totalorder %s862_s9, %s862_s9 }
  0x24   : > { %p865_p8 = pnand %p863_p7, %p851_p0  ;;  %p872_p5 = por %p871_p6, %p870_p9 }
  0x26   : > { %p866_p11 = pneg %p865_p8 }
  0x28   : > { %p873_p10 = pnand %p872_p5, %p866_p11 }
  0x2a   : > { %876 = shalt.err (!%p873_p10)
}
  0x2b   : > { %s979_s14 = smov 256   ;;  %s980_s17 = smov 16  }
  0x2c   : > { %791 = dma.hbm_to_vmem [thread:$0]  (!%p1082_p12), %s1217_s3, 4096, %s224_s15, [#allocation3], %s979_s14, %s979_s14, %s980_s17  }
  0x2d   : > { %s877_s23 = scalar_lea.hbm %s1219_s5, 4096 }
  0x2e   : > { %p878_p13 = scmp.ne.s32.totalorder %s1219_s5, %s877_s23  ;;  %p884_p9 = scmp.lt.u32.totalorder %s877_s23, %s1219_s5 }
  0x30   : > { %p880_p5 = pnand %p878_p13, %p851_p0 }
  0x32   : > { %p881_p6 = pneg %p880_p5 }
  0x34   : > { %p886_p10 = pnand %p884_p9, %p881_p6 }
  0x36   : > { %889 = shalt.err (!%p886_p10)
}
  0x37   : > { %s890_s15 = scalar_lea.vmem %s1086_s18, 4096  ;;  %p898_p4 = scmp.lt.s32.totalorder %s1086_s18, %s1086_s18 }
  0x38   : > { %p891_p1 = scmp.ne.s32.totalorder %s1086_s18, %s890_s15  ;;  %p899_p7 = scmp.lt.s32.totalorder %s890_s15, %s890_s15 }
  0x3a   : > { %p893_p2 = pnand %p891_p1, %p851_p0  ;;  %p900_p8 = por %p899_p7, %p898_p4 }
  0x3c   : > { %p894_p3 = pneg %p893_p2 }
  0x3e   : > { %p901_p11 = pnand %p900_p8, %p894_p3 }
  0x40   : > { %904 = shalt.err (!%p901_p11)
}
  0x41   : > { %s981_s10 = smov 128   ;;  %s982_s14 = smov 8  }
  0x42   : > { %794 = dma.hbm_to_vmem [thread:$0]  (!%p1082_p12), %s1219_s5, 4096, %s1086_s18, [#allocation6], %s981_s10, %s981_s10, %s982_s14  }
  0x43   : > { %p1230_p13 = scmp.ne.s32.totalorder %s1228_s13, 0 }
  0x44   : > { %p1231_p0 = scmp.eq.s32.totalorder (!%p1230_p13), %s1046_s28, 0 }
  0x45   : > { %265 = sbr.rel (%p1230_p13) target bundleno = 862 (0x35e), region = 48 }
  0x4c   : > { %950 = dma.done.wait (%p1231_p0), [#allocation3], 4096   ;;  %p1232_p5 = pmov %p1231_p0 }
  0x4d   : > { %p1233_p6 = pmov %p1231_p0 }
  0x4e   : > { %952 = vsyncadd (%p1232_p5), [#allocation3], 4294963200 }
  0x4f   : > { %954 = dma.done.wait (%p1233_p6), [#allocation6], 4096   ;;  %p1234_p9 = pmov %p1231_p0 }
  0x50   : > { %p300_p10 = scmp.lt.s32.totalorder %s1046_s28, 1  ;;  %v333_v1 = vld [vmem:[#allocation2 + $0x8] sm:$0xff]  ;;  %v335_v2 = vld [vmem:[#allocation2 + $0x18] sm:$0xff]  ;;  %v332_v3 = vld [vmem:[#allocation2] sm:$0xff]  ;;  %v983_v42 = vmov 0.0   ;;  %s297_s10 = sand.u32 1, %s967_s25  }
  0x51   : > { %956 = vsyncadd (%p1234_p9), [#allocation6], 4294963200  ;;  %v714_v4 = vpack.c.bf16 %v335_v2, %v333_v1  ;;  %v334_v5 = vld [vmem:[#allocation2 + $0x10] sm:$0xff]  ;;  %v337_v6 = vld [vmem:[#allocation2 + $0x28] sm:$0xff]  ;;  %440 = vmatprep.mubr.f32.mxu0 %v983_v42  ;;  %s670_s14 = sshll.u32 %s297_s10, 3  ;;  %s568_s23 = scalar_lea.sflag [#allocation4], %s297_s10 }
  0x52   : > { %s301_s16 = scalar_select %p300_p10, %s1046_s28, 1  ;;  %v339_v7 = vld [vmem:[#allocation2 + $0x38] sm:$0xff]  ;;  %v716_v8 = vpack.c.bf16 %v334_v5, %v332_v3  ;;  %v336_v10 = vld [vmem:[#allocation2 + $0x20] sm:$0xff]  ;;  %v338_v11 = vld [vmem:[#allocation2 + $0x30] sm:$0xff] }
  0x53   : > { %v718_v9 = vpack.c.bf16 %v339_v7, %v337_v6  ;;  %v341_v12 = vld [vmem:[#allocation2 + $0x48] sm:$0xff]  ;;  %715 = vmatprep.subr.bf16.mxu0 %v714_v4  ;;  %v343_v13 = vld [vmem:[#allocation2 + $0x58] sm:$0xff]  ;;  %v720_v14 = vpack.c.bf16 %v338_v11, %v336_v10  ;;  %v340_v16 = vld [vmem:[#allocation2 + $0x40] sm:$0xff]  ;;  %p1235_p1 = scmp.ne.s32.totalorder %s1226_s11, 0 }
  0x54   : > { %s671_s18 = sshll.u32 %s301_s16, 3  ;;  %717 = vmatpush1.bf16.msra.mxu0 %v716_v8  ;;  %v722_v15 = vpack.c.bf16 %v343_v13, %v341_v12  ;;  %v342_v17 = vld [vmem:[#allocation2 + $0x50] sm:$0xff]  ;;  %v345_v23 = vld [vmem:[#allocation2 + $0x68] sm:$0xff]  ;;  %v347_v24 = vld [vmem:[#allocation2 + $0x78] sm:$0xff]  ;;  %s676_s16 = sshll.u32 %s1046_s28, 7 }
  0x55   : > { %s303_s21 = scalar_lea.vmem %s1214_s0, %s671_s18  ;;  %719 = vmatprep.subr.bf16.mxu0 %v718_v9  ;;  %v724_v18 = vpack.c.bf16 %v342_v17, %v340_v16  ;;  %v726_v25 = vpack.c.bf16 %v347_v24, %v345_v23  ;;  %v344_v26 = vld [vmem:[#allocation2 + $0x60] sm:$0xff]  ;;  %v346_v27 = vld [vmem:[#allocation2 + $0x70] sm:$0xff]  ;;  %v349_v29 = vld [vmem:[#allocation2 + $0x88] sm:$0xff]  ;;  %s299_s18 = scalar_lea.vmem [#allocation7], %s670_s14 }
  0x56   : > { %v304_v0 = vld [vmem:[%s303_s21] sm:$0xff]  ;;  %v728_v28 = vpack.c.bf16 %v346_v27, %v344_v26  ;;  %v351_v30 = vld [vmem:[#allocation2 + $0x98] sm:$0xff]  ;;  %v350_v33 = vld [vmem:[#allocation2 + $0x90] sm:$0xff]  ;;  %s581_s20 = sshll.u32 %s299_s18, 4  ;;  %s1172_s22 = scalar_lea.hbm %s1221_s7, %s676_s16  ;;  %s1174_s20 = int_to_ptr.vmem [resolvable:$true] %s581_s20 }
  0x57   : > { %305 = vadd.xlane.f32.xlu0 %v304_v0  ;;  %v730_v31 = vpack.c.bf16 %v351_v30, %v349_v29  ;;  %v348_v32 = vld [vmem:[#allocation2 + $0x80] sm:$0xff]  ;;  %v353_v35 = vld [vmem:[#allocation2 + $0xa8] sm:$0xff]  ;;  %v355_v36 = vld [vmem:[#allocation2 + $0xb8] sm:$0xff]  ;;  %s905_s29 = scalar_lea.vmem %s1174_s20, 128  ;;  %s984_s28 = smov [#allocation7]  }
  0x58   : > { %721 = vmatpush1.bf16.msra.mxu0 %v720_v14  ;;  %v732_v34 = vpack.c.bf16 %v350_v33, %v348_v32  ;;  %v352_v37 = vld [vmem:[#allocation2 + $0xa0] sm:$0xff]  ;;  %v734_v38 = vpack.c.bf16 %v355_v36, %v353_v35  ;;  %v354_v39 = vld [vmem:[#allocation2 + $0xb0] sm:$0xff]  ;;  %v357_v40 = vld [vmem:[#allocation2 + $0xc8] sm:$0xff]  ;;  %p906_p12 = scmp.ne.s32.totalorder %s1174_s20, %s905_s29  ;;  %s909_s8 = sshll.u32 %s984_s28, 4  ;;  %s910_s8 = int_to_ptr.vmem [resolvable:$false] %s909_s8 }
  0x59   : > { %723 = vmatprep.subr.bf16.mxu0 %v722_v15  ;;  %v359_v41 = vld [vmem:[#allocation2 + $0xd8] sm:$0xff]  ;;  %v736_v43 = vpack.c.bf16 %v354_v39, %v352_v37  ;;  %v356_v45 = vld [vmem:[#allocation2 + $0xc0] sm:$0xff]  ;;  %v358_v46 = vld [vmem:[#allocation2 + $0xd0] sm:$0xff]  ;;  %s911_s9 = scalar_lea.vmem %s910_s8, 256  ;;  %p912_p4 = scmp.lt.s32.totalorder %s1174_s20, %s910_s8 }
  0x5a   : > { %v738_v44 = vpack.c.bf16 %v359_v41, %v357_v40  ;;  %v361_v47 = vld [vmem:[#allocation2 + $0xe8] sm:$0xff]  ;;  %v363_v48 = vld [vmem:[#allocation2 + $0xf8] sm:$0xff]  ;;  %v740_v49 = vpack.c.bf16 %v358_v46, %v356_v45  ;;  %v360_v51 = vld [vmem:[#allocation2 + $0xe0] sm:$0xff]  ;;  %p907_p2 = pnand %p906_p12, %p1235_p1  ;;  %p913_p7 = scmp.lt.s32.totalorder %s911_s9, %s905_s29 }
  0x5b   : > { %v742_v50 = vpack.c.bf16 %v363_v48, %v361_v47  ;;  %v362_v52 = vld [vmem:[#allocation2 + $0xf0] sm:$0xff]  ;;  %v473_v54 = vld [vmem:[#allocation5 + $0x80] sm:$0xff]  ;;  %v474_v55 = vld [vmem:[#allocation5 + $0x88] sm:$0xff]  ;;  %v366_v47 = vlaneseq }
  0x5c   : > { %725 = vmatpush1.bf16.msra.mxu0 %v724_v18  ;;  %v744_v53 = vpack.c.bf16 %v362_v52, %v360_v51  ;;  %v457_v56 = vld [vmem:[#allocation5] sm:$0xff]  ;;  %v746_v57 = vpack.c.bf16 %v474_v55, %v473_v54  ;;  %v458_v58 = vld [vmem:[#allocation5 + $0x8] sm:$0xff]  ;;  %v475_v59 = vld [vmem:[#allocation5 + $0x90] sm:$0xff]  ;;  %p908_p3 = pneg %p907_p2  ;;  %p914_p8 = por %p913_p7, %p912_p4 }
  0x5d   : > { %727 = vmatprep.subr.bf16.mxu0 %v726_v25  ;;  %v476_v60 = vld [vmem:[#allocation5 + $0x98] sm:$0xff]  ;;  %v748_v61 = vpack.c.bf16 %v458_v58, %v457_v56  ;;  %v459_v63 = vld [vmem:[#allocation5 + $0x10] sm:$0xff]  ;;  %v477_v1 = vld [vmem:[#allocation5 + $0xa0] sm:$0xff]  ;;  %v367_v48 = vshrl.u32 %v366_v47, 7 }
  0x5e   : > { %v750_v62 = vpack.c.bf16 %v476_v60, %v475_v59  ;;  %747 = vmatprep.subr.bf16.mxu1 %v746_v57  ;;  %v478_v2 = vld [vmem:[#allocation5 + $0xa8] sm:$0xff]  ;;  %v461_v5 = vld [vmem:[#allocation5 + $0x20] sm:$0xff]  ;;  %v479_v17 = vld [vmem:[#allocation5 + $0xb0] sm:$0xff]  ;;  %p915_p11 = pnand %p914_p8, %p908_p3 }
  0x5f   : > { %749 = vmatpush3.bf16.msra.mxu1 %v748_v61  ;;  %v754_v4 = vpack.c.bf16 %v478_v2, %v477_v1  ;;  %v462_v6 = vld [vmem:[#allocation5 + $0x28] sm:$0xff]  ;;  %v672_v12 = vld [vmem:[%s1215_s1] ss:$0 sm:$0xff]  ;;  %v480_v18 = vld [vmem:[#allocation5 + $0xb8] sm:$0xff]  ;;  %v372_v51 = vsub.s32 1, %v367_v48 }
  0x60   : > { %729 = vmatpush1.bf16.msra.mxu0 %v728_v28  ;;  %751 = vmatprep.subr.bf16.mxu1 %v750_v62  ;;  %v756_v7 = vpack.c.bf16 %v462_v6, %v461_v5  ;;  %v673_v14 = vld [vmem:[%s1216_s2] ss:$0 sm:$0xff]  ;;  %v482_v25 = vld [vmem:[#allocation5 + $0xc8] sm:$0xff]  ;;  %v483_v29 = vld [vmem:[#allocation5 + $0xd0] sm:$0xff] }
  0x61   : > { %731 = vmatprep.subr.bf16.mxu0 %v730_v31  ;;  %v481_v24 = vld [vmem:[#allocation5 + $0xc0] sm:$0xff]  ;;  %v484_v30 = vld [vmem:[#allocation5 + $0xd8] sm:$0xff]  ;;  %v467_v32 = vld [vmem:[#allocation5 + $0x50] sm:$0xff] }
  0x62   : > { %v762_v26 = vpack.c.bf16 %v482_v25, %v481_v24  ;;  %v465_v27 = vld [vmem:[#allocation5 + $0x40] sm:$0xff]  ;;  %v766_v31 = vpack.c.bf16 %v484_v30, %v483_v29  ;;  %v468_v33 = vld [vmem:[#allocation5 + $0x58] sm:$0xff]  ;;  %v486_v36 = vld [vmem:[#allocation5 + $0xe8] sm:$0xff] }
  0x63   : > { %v485_v35 = vld [vmem:[#allocation5 + $0xe0] sm:$0xff]  ;;  %v470_v39 = vld [vmem:[#allocation5 + $0x68] sm:$0xff]  ;;  %v487_v41 = vld [vmem:[#allocation5 + $0xf0] sm:$0xff] }
  0x64   : > { %733 = vmatpush1.bf16.msra.mxu0 %v732_v34  ;;  %v768_v34 = vpack.c.bf16 %v468_v33, %v467_v32  ;;  %v770_v37 = vpack.c.bf16 %v486_v36, %v485_v35  ;;  %v488_v42 = vld [vmem:[#allocation5 + $0xf8] sm:$0xff]  ;;  %v674_v5 = vld [vmem:[%s1220_s6] ss:$0 sm:$0xff] }
  0x65   : > { %735 = vmatprep.subr.bf16.mxu0 %v734_v38  ;;  %v469_v38 = vld [vmem:[#allocation5 + $0x60] sm:$0xff]  ;;  %v472_v45 = vld [vmem:[#allocation5 + $0x78] sm:$0xff] }
  0x66   : > { %v772_v40 = vpack.c.bf16 %v470_v39, %v469_v38 }
  0x68   : > { %737 = vmatpush1.bf16.msra.mxu0 %v736_v43  ;;  %v774_v43 = vpack.c.bf16 %v488_v42, %v487_v41 }
  0x69   : > { %739 = vmatprep.subr.bf16.mxu0 %v738_v44  ;;  %v471_v44 = vld [vmem:[#allocation5 + $0x70] sm:$0xff] }
  0x6a   : > { %v776_v46 = vpack.c.bf16 %v472_v45, %v471_v44 }
  0x6c   : > { %741 = vmatpush1.bf16.msra.mxu0 %v740_v49  ;;  %v368_v49 = vsub.s32 0, %v367_v48 }
  0x6d   : > { %743 = vmatprep.subr.bf16.mxu0 %v742_v50  ;;  %v364_v50 = vld [vmem:[%s1218_s4] sm:$0x3] }
  0x6e   : > { %v369_v52 = vrot.slane %v364_v50, %v368_v49 }
  0x70   : > { %745 = vmatpush1.bf16.msra.mxu0 %v744_v53  ;;  %v373_v53 = vrot.slane %v364_v50, %v372_v51 }
  0xe4   : > { %v306_v19 = vpop.xlane.xlu0 %305 }
  0xe5   : > { %v307_v20 = vmul.f32 0.0078125, %v306_v19  ;;  %v758_v19 = vpack.c.bf16 %v480_v18, %v479_v17 }
  0xe7   : > { %v1150_v21 = vsub.f32 %v304_v0, %v307_v20  ;;  %v460_v0 = vld [vmem:[#allocation5 + $0x18] sm:$0xff]  ;;  %v463_v20 = vld [vmem:[#allocation5 + $0x30] sm:$0xff] }
  0xe8   : > { %v752_v3 = vpack.c.bf16 %v460_v0, %v459_v63 }
  0xe9   : > { %v309_v22 = vmul.f32 %v1150_v21, %v1150_v21 }
  0xea   : > { %753 = vmatpush3.bf16.msra.mxu1 %v752_v3 }
  0xeb   : > { %310 = vadd.xlane.f32.xlu0 %v309_v22  ;;  %755 = vmatprep.subr.bf16.mxu1 %v754_v4  ;;  %v464_v22 = vld [vmem:[#allocation5 + $0x38] sm:$0xff] }
  0xec   : > { %v760_v23 = vpack.c.bf16 %v464_v22, %v463_v20 }
  0xee   : > { %757 = vmatpush3.bf16.msra.mxu1 %v756_v7 }
  0xef   : > { %759 = vmatprep.subr.bf16.mxu1 %v758_v19 }
  0xf2   : > { %761 = vmatpush3.bf16.msra.mxu1 %v760_v23 }
  0xf3   : > { %763 = vmatprep.subr.bf16.mxu1 %v762_v26 }
 0x178   : > { %v311_v8 = vpop.xlane.xlu0 %310 }
 0x179   : > { %v312_v9 = vmul.f32 0.0078125, %v311_v8 }
 0x17b   : > { %v313_v10 = vadd.f32 1e-05, %v312_v9 }
 0x17d   : > { %843 = vrsqrt.f32 %v313_v10 }
 0x187   : > { %v844_v11 = vpop.eup %843 }
 0x188   : > { %v315_v13 = vmul.f32 %v844_v11, %v1150_v21  ;;  %v466_v21 = vld [vmem:[#allocation5 + $0x48] sm:$0xff] }
 0x189   : > { %v764_v28 = vpack.c.bf16 %v466_v21, %v465_v27 }
 0x18a   : > { %v323_v15 = vmul.f32 %v672_v12, %v315_v13 }
 0x18b   : > { %765 = vmatpush3.bf16.msra.mxu1 %v764_v28 }
 0x18c   : > { %v331_v16 = vadd.f32 %v673_v14, %v323_v15  ;;  %767 = vmatprep.subr.bf16.mxu1 %v766_v31 }
 0x18e   : > { %441 = vmatmul.mubr.f32.vlgmr.msra.gmra.mrb[0].mxu0 %v331_v16 }
 0x18f   : > { %769 = vmatpush3.bf16.msra.mxu1 %v768_v34 }
 0x190   : > { %771 = vmatprep.subr.bf16.mxu1 %v770_v37 }
 0x193   : > { %773 = vmatpush3.bf16.msra.mxu1 %v772_v40 }
 0x194   : > { %775 = vmatprep.subr.bf16.mxu1 %v774_v43 }
 0x197   : > { %777 = vmatpush3.bf16.msra.mxu1 %v776_v46 }
 0x261   : > { %v442_v54 = vpop.f32.mrb[0].mxu0 }
 0x262   : > { %v443_v55 = vadd.f32 %v442_v54, %v369_v52  ;;  %v444_v56 = vpop.f32.mrb[1].mxu0 }
 0x263   : > { %v445_v57 = vadd.f32 %v444_v56, %v373_v53 }
 0x264   : > { %v449_v58 = vmul.f32 0.70710677, %v443_v55  ;;  %v447_v1 = vmul.f32 0.5, %v443_v55 }
 0x265   : > { %v450_v59 = vmul.f32 0.70710677, %v445_v57  ;;  %v448_v63 = vmul.f32 0.5, %v445_v57 }
 0x266   : > { %845 = verf.f32 %v449_v58 }
 0x267   : > { %847 = verf.f32 %v450_v59 }
 0x270   : > { %v846_v60 = vpop.eup %845 }
 0x271   : > { %v848_v61 = vpop.eup %847  ;;  %v453_v62 = vadd.f32 1.0, %v846_v60 }
 0x272   : > { %v454_v0 = vadd.f32 1.0, %v848_v61 }
 0x273   : > { %v455_v3 = vmul.f32 %v453_v62, %v447_v1 }
 0x274   : > { %v456_v2 = vmul.f32 %v454_v0, %v448_v63 }
 0x276   : > { %560 = vmatprep.mubr.f32.mxu1 %v456_v2 }
 0x277   : > { %561 = vmatmul.mubr.f32.vlgmr.msra.gmra.mrb[0].mxu1 %v455_v3 }
 0x34a   : > { %v711_v4 = vpop.f32.mrb[0].mxu1 }
 0x34b   : > { %v712_v6 = vpop.f32.mrb[1].mxu1 }
 0x34c   : > { %v713_v7 = vadd.f32 %v712_v6, %v711_v4 }
 0x34e   : > { %v563_v8 = vadd.f32 %v713_v7, %v674_v5 }
 0x350   : > { %566 = vst [vmem:[%s299_s18] sm:$0xff] %v563_v8 }
 0x351   : > { %918 = shalt.err (!%p915_p11)
}
 0x352   : > { %s919_s15 = scalar_lea.hbm %s1172_s22, 128  ;;  %s923_s17 = scalar_lea.hbm %s1221_s7, 256 }
 0x353   : > { %p920_p13 = scmp.ne.s32.totalorder %s1172_s22, %s919_s15  ;;  %p924_p6 = scmp.lt.u32.totalorder %s1172_s22, %s1221_s7 }
 0x354   : > { %p925_p9 = scmp.lt.u32.totalorder %s923_s17, %s919_s15  ;;  %p927_p12 = scmp.lt.u32.totalorder %s919_s15, %s1172_s22 }
 0x355   : > { %p921_p0 = pnand %p920_p13, %p1235_p1 }
 0x356   : > { %p926_p10 = por %p925_p9, %p924_p6 }
 0x357   : > { %p922_p5 = pneg %p921_p0 }
 0x358   : > { %p928_p2 = por %p927_p12, %p926_p10 }
 0x35a   : > { %p929_p3 = pnand %p928_p2, %p922_p5 }
 0x35c   : > { %932 = shalt.err (!%p929_p3)
}
 0x35d   : > { %786 = dma.vmem_to_hbm [thread:$0]  (%p1235_p1), %s1174_s20, 128, %s1172_s22, %s568_s23  }
 0x35e PF: > { %p803_p4 = scmp.ge.s32.totalorder %s975_s27, 2  ;;  %s593_s18 = sand.u32 1, %s963_s24  }
 0x35f   : > { %p1236_p7 = scmp.ne.s32.totalorder %s1227_s12, 0  ;;  %s594_s13 = scalar_lea.sflag [#allocation4], %s593_s18 }
 0x361   : > { %p796_p8 = pnand %p803_p4, %p1236_p7 }
 0x363   : > { %958 = dma.done.wait (!%p796_p8), %s594_s13, 128  }
 0x364   : > { %960 = vsyncadd (!%p796_p8), %s594_s13, 4294967168  ;;  %s1237_s21 = sld [smem:[#allocation11_spill]]  ;;  %p19_p11 = scmp.ge.s32.totalorder %s1050_s30, 4  }
 0x365   : > { %s1238_s24 = smov %s967_s25  ;;  %s1239_s25 = smov %s971_s26 }
 0x366   : > { %s1241_s27 = smov %s1050_s30  ;;  %21 = sbr.rel (!%p19_p11) target bundleno = 5 (0x5), region = 92 }
 0x36a   : > { %s1240_s26 = smov %s1237_s21 }
 0x36d   :  { %599 = vsyncpa [#allocation3], 1 }
 0x36e   :  { %601 = vsyncpa [#allocation3 + $0x1], 1 }
 0x36f   :  { %602 = vsyncpa [#allocation6], 1 }
 0x370   :  { %603 = vsyncpa [#allocation4], 1 }
 0x371   :  { %605 = vsyncpa [#allocation4 + $0x1], 1 }

</bundles_post_ra>
